<compile_context>
chip_gen: v7x
topology: tpu7x:2x2x1
jax: 0.10.0
libtpu: 0.0.40
codegen_flags: <defaults>
</compile_context>

<pallas_src>
import functools

import jax
import jax.numpy as jnp
import numpy as np
from jax.experimental import pallas as pl
from jax.experimental.pallas import tpu as pltpu


def preact_resblock1d_kernel(x_ref, w1_ref, w2_ref, bn_ref, o_ref,
                             pad_ref, *im_scratch,
                             K, dilation, L, P, use_im2col):
    C = x_ref.shape[0]
    Lp = L + 2 * P
    cdtype = pad_ref.dtype
    im_ref = im_scratch[0] if use_im2col else None

    s1 = bn_ref[:, 0:1]          # bn1 scale
    b1 = bn_ref[:, 1:2]          # bn1 shift
    b2 = bn_ref[:, 2:3]          # bn2 shift (bn2 scale is pre-folded into w1)

    # Zero only the 2P pad edges (the L-wide interior is always overwritten).
    # Re-done every grid step: two tiny slab stores, and safe when the
    # "parallel" batch axis is sharded across TensorCores.
    if P > 0:
        pad_ref[:, 0:P] = jnp.zeros((C, P), cdtype)
        pad_ref[:, P + L:Lp] = jnp.zeros((C, P), cdtype)

    def conv(w_ref):
        if use_im2col:
            # Small-C path: one deep (C, K*C) @ (K*C, L) dot; RHS assembled
            # with a single (C, L) slab copy per tap.
            for k in range(K):
                off = k * dilation
                im_ref[k * C:(k + 1) * C, :] = pad_ref[:, off:off + L]
            return jnp.dot(w_ref[...], im_ref[...],
                           preferred_element_type=jnp.float32)
        # Main path: K accumulating (C, C) @ (C, L) dots whose RHS is read
        # straight from the padded scratch -- no im2col materialization.
        acc = None
        for k in range(K):
            off = k * dilation
            tap = jnp.dot(w_ref[k], pad_ref[:, off:off + L],
                          preferred_element_type=jnp.float32)
            acc = tap if acc is None else acc + tap
        return acc

    # bn1 + relu, fused straight into the padded-scratch fill (x not kept live).
    pad_ref[:, P:P + L] = jnp.maximum(
        x_ref[...].astype(jnp.float32) * s1 + b1, 0.0).astype(cdtype)

    # conv1 (bn2 scale folded into w1) + bn2 shift + relu, back into scratch.
    pad_ref[:, P:P + L] = jnp.maximum(conv(w1_ref) + b2, 0.0).astype(cdtype)

    # conv2 + residual (re-read the x block only here instead of holding it).
    o_ref[...] = (conv(w2_ref) + x_ref[...].astype(jnp.float32)).astype(o_ref.dtype)


def preact_resblock1d(x, w1, w2, bn1, bn2, *, dilation=1, eps=1e-5,
                      compute_dtype=jnp.float32, use_im2col=None):
    """x: (N, C, L); w1, w2: (Cout, Cin, K) like torch Conv1d weight;
    bn = (gamma, beta, running_mean, running_var), each (C,).  Eval-mode BN."""
    N, C, L = x.shape
    Cout, Cin, K = w1.shape
    assert Cout == C and Cin == C, "in_planes must equal planes for the residual add"
    # Symmetric 'same' padding (PyTorch padding=(K-1)*dilation//2) only keeps
    # the length when the effective kernel support (K-1)*dilation is even.
    assert (K - 1) * dilation % 2 == 0, "requires odd effective kernel support"
    P = (K - 1) * dilation // 2
    Lp = L + 2 * P

    if use_im2col is None:
        use_im2col = C < 128   # deep K*C contraction only pays off for small C

    compute_dtype = np.dtype(compute_dtype)

    def fold(bn):
        gamma, beta, mean, var = (jnp.asarray(t, jnp.float32) for t in bn)
        scale = gamma / jnp.sqrt(var + eps)
        return scale, beta - mean * scale

    s1, b1 = fold(bn1)
    s2, b2 = fold(bn2)
    bn_params = jnp.stack([s1, b1, b2], axis=1)                  # (C, 3) f32

    # (Cout, Cin, K) -> (K, Cout, Cin); fold bn2's per-channel scale into
    # conv1's output rows (free weight transform).
    w1_t = jnp.transpose(w1, (2, 0, 1)).astype(jnp.float32) * s2[None, :, None]
    w2_t = jnp.transpose(w2, (2, 0, 1)).astype(jnp.float32)
    if use_im2col:
        # (K, Cout, Cin) -> (Cout, K*Cin); column order [tap k][cin] matches
        # the im2col row order used in the kernel.
        w1_t = jnp.transpose(w1_t, (1, 0, 2)).reshape(C, K * C)
        w2_t = jnp.transpose(w2_t, (1, 0, 2)).reshape(C, K * C)
        w_block, w_map = (C, K * C), (lambda n: (0, 0))
    else:
        w_block, w_map = (K, C, C), (lambda n: (0, 0, 0))
    w1_t = w1_t.astype(compute_dtype)
    w2_t = w2_t.astype(compute_dtype)

    scratch = [pltpu.VMEM((C, Lp), compute_dtype)]               # padded activations
    if use_im2col:
        scratch.append(pltpu.VMEM((K * C, L), compute_dtype))    # im2col RHS

    kernel = functools.partial(preact_resblock1d_kernel, K=K, dilation=dilation,
                               L=L, P=P, use_im2col=use_im2col)

    # Explicit VMEM budget from actual block + scratch bytes: double-buffered
    # per-sample x/out blocks, single-buffered weights/BN, scratch slabs, plus
    # compiler slack.  Capped at 64 MiB so the budget also holds on v7x.
    cbytes = compute_dtype.itemsize
    xbytes = C * L * x.dtype.itemsize
    need = (2 * 2 * xbytes                       # x block + out block, 2 buffers each
            + 2 * K * C * C * cbytes             # w1, w2 (single buffer)
            + C * 3 * 4                          # bn params
            + C * Lp * cbytes                    # padded-activation scratch
            + (K * C * L * cbytes if use_im2col else 0))
    vmem_limit = min(64 << 20, max(16 << 20, 2 * need))

    def build(single_buffer_consts):
        const_kw = ({"pipeline_mode": pl.Buffered(1)}
                    if single_buffer_consts else {})
        return pl.pallas_call(
            kernel,
            out_shape=jax.ShapeDtypeStruct((N, C, L), x.dtype),
            grid_spec=pltpu.PrefetchScalarGridSpec(
                num_scalar_prefetch=0,
                grid=(N,),
                in_specs=[
                    pl.BlockSpec((None, C, L), lambda n: (n, 0, 0)),     # x (1 sample)
                    pl.BlockSpec(w_block, w_map, **const_kw),            # w1 (bn2-scaled)
                    pl.BlockSpec(w_block, w_map, **const_kw),            # w2
                    pl.BlockSpec((C, 3), lambda n: (0, 0), **const_kw),  # [s1, b1, b2]
                ],
                out_specs=pl.BlockSpec((None, C, L), lambda n: (n, 0, 0)),
                scratch_shapes=scratch,
            ),
            compiler_params=pltpu.CompilerParams(
                dimension_semantics=("parallel",),
                vmem_limit_bytes=vmem_limit),
        )

    try:
        # Grid-invariant weight/BN blocks: single pipeline buffer.
        return build(True)(x, w1_t, w2_t, bn_params)
    except Exception:
        # Fallback for jax builds without BlockSpec.pipeline_mode / Buffered(1).
        return build(False)(x, w1_t, w2_t, bn_params)


def reference(x, w1, w2, bn1, bn2, *, dilation=1, eps=1e-5):
    """Pure-JAX reference matching PyTorch eval-mode forward."""
    def bn(t, p):
        gamma, beta, mean, var = p
        inv = 1.0 / jnp.sqrt(var + eps)
        return (t - mean[None, :, None]) * inv[None, :, None] * gamma[None, :, None] \
               + beta[None, :, None]

    def conv(t, w):
        P = (w.shape[-1] - 1) * dilation // 2
        return jax.lax.conv_general_dilated(
            t, w, window_strides=(1,), padding=[(P, P)],
            rhs_dilation=(dilation,), dimension_numbers=('NCH', 'OIH', 'NCH'))

    out = conv(jax.nn.relu(bn(x, bn1)), w1)
    out = conv(jax.nn.relu(bn(out, bn2)), w2)
    return out + x


if __name__ == "__main__":
    N, C, L, K = 2, 8, 16, 5

    key = jax.random.PRNGKey(0)
    keys = jax.random.split(key, 9)

    x = jax.random.normal(keys[0], (N, C, L), dtype=jnp.float32)
    w1 = jax.random.normal(keys[1], (C, C, K), dtype=jnp.float32) * 0.1
    w2 = jax.random.normal(keys[2], (C, C, K), dtype=jnp.float32) * 0.1

    bn1 = (jax.random.uniform(keys[3], (C,), minval=0.5, maxval=1.5),   # gamma
           jax.random.normal(keys[4], (C,)) * 0.1,                      # beta
           jax.random.normal(keys[5], (C,)) * 0.1,                      # running_mean
           jax.random.uniform(keys[6], (C,), minval=0.5, maxval=2.0))   # running_var
    bn2 = (jax.random.uniform(keys[7], (C,), minval=0.5, maxval=1.5),
           jax.random.normal(keys[8], (C,)) * 0.1,
           jnp.zeros((C,), jnp.float32),
           jnp.ones((C,), jnp.float32))

    for dilation in (1, 2):
        ref = reference(x, w1, w2, bn1, bn2, dilation=dilation)
        # Exercise both conv paths: deep im2col dot (small-C default) and the
        # per-tap accumulating dots (production path for C >= 128).
        for use_im2col in (True, False):
            out = jax.block_until_ready(
                preact_resblock1d(x, w1, w2, bn1, bn2, dilation=dilation,
                                  use_im2col=use_im2col))
            assert out.shape == (N, C, L) and out.dtype == x.dtype
            err = jnp.max(jnp.abs(out - ref))
            assert jnp.allclose(out, ref, rtol=1e-4, atol=1e-4), \
                f"dilation={dilation} im2col={use_im2col}: max abs err {err}"

    # bf16 compute path (f32 MXU accumulation): loose parity smoke test.
    out_bf16 = jax.block_until_ready(
        preact_resblock1d(x, w1, w2, bn1, bn2, dilation=1,
                          compute_dtype=jnp.bfloat16, use_im2col=False))
    ref1 = reference(x, w1, w2, bn1, bn2, dilation=1)
    bf16_err = float(jnp.max(jnp.abs(out_bf16 - ref1)))
    assert bf16_err < 1e-1, f"bf16 path max abs err {bf16_err}"

    print("KERNEL_OK")
</pallas_src>

<mosaic_0001>
module attributes {stable_mosaic.version = 11 : i64} {
  func.func @preact_resblock1d_kernel(%arg0: i32, %arg1: memref<1x8x16xf32, #tpu.memory_space<vmem>>, %arg2: memref<8x40xf32, #tpu.memory_space<vmem>>, %arg3: memref<8x40xf32, #tpu.memory_space<vmem>>, %arg4: memref<8x3xf32, #tpu.memory_space<vmem>>, %arg5: memref<1x8x16xf32, #tpu.memory_space<vmem>>, %arg6: memref<8x20xf32, #tpu.memory_space<vmem>>, %arg7: memref<40x16xf32, #tpu.memory_space<vmem>>) attributes {dimension_semantics = [#tpu.dimension_semantics<parallel>], iteration_bounds = array<i64: 2>, scalar_prefetch = 0 : i64, scratch_operands = 2 : i64, tpu.core_type = #tpu.core_type<tc>, window_params = [{transform_indices = @transform_0, window_bounds = array<i64: 1, 8, 16>}, {pipeline_mode = #tpu.pipeline_mode<synchronous>, transform_indices = @transform_1, window_bounds = array<i64: 8, 40>}, {pipeline_mode = #tpu.pipeline_mode<synchronous>, transform_indices = @transform_2, window_bounds = array<i64: 8, 40>}, {pipeline_mode = #tpu.pipeline_mode<synchronous>, transform_indices = @transform_3, window_bounds = array<i64: 8, 3>}, {transform_indices = @transform_4, window_bounds = array<i64: 1, 8, 16>}]} {
    %c0 = arith.constant 0 : index
    %c0_0 = arith.constant 0 : index
    %0 = vector.load %arg4[%c0, %c0_0] : memref<8x3xf32, #tpu.memory_space<vmem>>, vector<8x1xf32>
    %c0_1 = arith.constant 0 : index
    %c1 = arith.constant 1 : index
    %1 = vector.load %arg4[%c0_1, %c1] : memref<8x3xf32, #tpu.memory_space<vmem>>, vector<8x1xf32>
    %c0_2 = arith.constant 0 : index
    %c2 = arith.constant 2 : index
    %2 = vector.load %arg4[%c0_2, %c2] : memref<8x3xf32, #tpu.memory_space<vmem>>, vector<8x1xf32>
    %cst = arith.constant 0.000000e+00 : f32
    %3 = vector.broadcast %cst : f32 to vector<8x2xf32>
    %c0_3 = arith.constant 0 : index
    %c0_4 = arith.constant 0 : index
    %4 = vector.load %arg6[%c0_3, %c0_4] : memref<8x20xf32, #tpu.memory_space<vmem>>, vector<8x2xf32>
    tpu.vector_store %arg6[%c0_3, %c0_4], %3 {strides = array<i32>} : memref<8x20xf32, #tpu.memory_space<vmem>>, vector<8x2xf32>,
    %cst_5 = arith.constant 0.000000e+00 : f32
    %5 = vector.broadcast %cst_5 : f32 to vector<8x2xf32>
    %c0_6 = arith.constant 0 : index
    %c18 = arith.constant 18 : index
    %6 = vector.load %arg6[%c0_6, %c18] : memref<8x20xf32, #tpu.memory_space<vmem>>, vector<8x2xf32>
    tpu.vector_store %arg6[%c0_6, %c18], %5 {strides = array<i32>} : memref<8x20xf32, #tpu.memory_space<vmem>>, vector<8x2xf32>,
    %c0_7 = arith.constant 0 : index
    %c0_8 = arith.constant 0 : index
    %c0_9 = arith.constant 0 : index
    %7 = vector.load %arg1[%c0_7, %c0_8, %c0_9] : memref<1x8x16xf32, #tpu.memory_space<vmem>>, vector<1x8x16xf32>
    %8 = vector.shape_cast %7 : vector<1x8x16xf32> to vector<8x16xf32>
    %9 = vector.broadcast %0 : vector<8x1xf32> to vector<8x16xf32>
    %10 = arith.mulf %8, %9 : vector<8x16xf32>
    %11 = vector.broadcast %1 : vector<8x1xf32> to vector<8x16xf32>
    %12 = arith.addf %10, %11 : vector<8x16xf32>
    %cst_10 = arith.constant 0.000000e+00 : f32
    %13 = vector.broadcast %cst_10 : f32 to vector<8x16xf32>
    %14 = arith.maximumf %12, %13 : vector<8x16xf32>
    %c0_11 = arith.constant 0 : index
    %c2_12 = arith.constant 2 : index
    %15 = vector.load %arg6[%c0_11, %c2_12] : memref<8x20xf32, #tpu.memory_space<vmem>>, vector<8x16xf32>
    tpu.vector_store %arg6[%c0_11, %c2_12], %14 {strides = array<i32>} : memref<8x20xf32, #tpu.memory_space<vmem>>, vector<8x16xf32>,
    %c0_13 = arith.constant 0 : index
    %c0_14 = arith.constant 0 : index
    %16 = vector.load %arg6[%c0_13, %c0_14] : memref<8x20xf32, #tpu.memory_space<vmem>>, vector<8x16xf32>
    %c0_15 = arith.constant 0 : index
    %c0_16 = arith.constant 0 : index
    %17 = vector.load %arg7[%c0_15, %c0_16] : memref<40x16xf32, #tpu.memory_space<vmem>>, vector<8x16xf32>
    tpu.vector_store %arg7[%c0_15, %c0_16], %16 {strides = array<i32>} : memref<40x16xf32, #tpu.memory_space<vmem>>, vector<8x16xf32>,
    %c0_17 = arith.constant 0 : index
    %c1_18 = arith.constant 1 : index
    %18 = vector.load %arg6[%c0_17, %c1_18] : memref<8x20xf32, #tpu.memory_space<vmem>>, vector<8x16xf32>
    %c8 = arith.constant 8 : index
    %c0_19 = arith.constant 0 : index
    %19 = vector.load %arg7[%c8, %c0_19] : memref<40x16xf32, #tpu.memory_space<vmem>>, vector<8x16xf32>
    tpu.vector_store %arg7[%c8, %c0_19], %18 {strides = array<i32>} : memref<40x16xf32, #tpu.memory_space<vmem>>, vector<8x16xf32>,
    %c0_20 = arith.constant 0 : index
    %c2_21 = arith.constant 2 : index
    %20 = vector.load %arg6[%c0_20, %c2_21] : memref<8x20xf32, #tpu.memory_space<vmem>>, vector<8x16xf32>
    %c16 = arith.constant 16 : index
    %c0_22 = arith.constant 0 : index
    %21 = vector.load %arg7[%c16, %c0_22] : memref<40x16xf32, #tpu.memory_space<vmem>>, vector<8x16xf32>
    tpu.vector_store %arg7[%c16, %c0_22], %20 {strides = array<i32>} : memref<40x16xf32, #tpu.memory_space<vmem>>, vector<8x16xf32>,
    %c0_23 = arith.constant 0 : index
    %c3 = arith.constant 3 : index
    %22 = vector.load %arg6[%c0_23, %c3] : memref<8x20xf32, #tpu.memory_space<vmem>>, vector<8x16xf32>
    %c24 = arith.constant 24 : index
    %c0_24 = arith.constant 0 : index
    %23 = vector.load %arg7[%c24, %c0_24] : memref<40x16xf32, #tpu.memory_space<vmem>>, vector<8x16xf32>
    tpu.vector_store %arg7[%c24, %c0_24], %22 {strides = array<i32>} : memref<40x16xf32, #tpu.memory_space<vmem>>, vector<8x16xf32>,
    %c0_25 = arith.constant 0 : index
    %c4 = arith.constant 4 : index
    %24 = vector.load %arg6[%c0_25, %c4] : memref<8x20xf32, #tpu.memory_space<vmem>>, vector<8x16xf32>
    %c32 = arith.constant 32 : index
    %c0_26 = arith.constant 0 : index
    %25 = vector.load %arg7[%c32, %c0_26] : memref<40x16xf32, #tpu.memory_space<vmem>>, vector<8x16xf32>
    tpu.vector_store %arg7[%c32, %c0_26], %24 {strides = array<i32>} : memref<40x16xf32, #tpu.memory_space<vmem>>, vector<8x16xf32>,
    %c0_27 = arith.constant 0 : index
    %c0_28 = arith.constant 0 : index
    %26 = vector.load %arg2[%c0_27, %c0_28] : memref<8x40xf32, #tpu.memory_space<vmem>>, vector<8x40xf32>
    %c0_29 = arith.constant 0 : index
    %c0_30 = arith.constant 0 : index
    %27 = vector.load %arg7[%c0_29, %c0_30] : memref<40x16xf32, #tpu.memory_space<vmem>>, vector<40x16xf32>
    %cst_31 = arith.constant dense<0.000000e+00> : vector<8x16xf32>
    %28 = tpu.matmul %26, %27, %cst_31 {dimension_numbers = #tpu.dot_dimension_numbers<[1], [0], [0], [1], [0, 0, 1, 1], [], []>} : vector<8x40xf32>, vector<40x16xf32>, vector<8x16xf32> -> vector<8x16xf32>
    %29 = vector.broadcast %2 : vector<8x1xf32> to vector<8x16xf32>
    %30 = arith.addf %28, %29 : vector<8x16xf32>
    %cst_32 = arith.constant 0.000000e+00 : f32
    %31 = vector.broadcast %cst_32 : f32 to vector<8x16xf32>
    %32 = arith.maximumf %30, %31 : vector<8x16xf32>
    %c0_33 = arith.constant 0 : index
    %c2_34 = arith.constant 2 : index
    %33 = vector.load %arg6[%c0_33, %c2_34] : memref<8x20xf32, #tpu.memory_space<vmem>>, vector<8x16xf32>
    tpu.vector_store %arg6[%c0_33, %c2_34], %32 {strides = array<i32>} : memref<8x20xf32, #tpu.memory_space<vmem>>, vector<8x16xf32>,
    %c0_35 = arith.constant 0 : index
    %c0_36 = arith.constant 0 : index
    %34 = vector.load %arg6[%c0_35, %c0_36] : memref<8x20xf32, #tpu.memory_space<vmem>>, vector<8x16xf32>
    %c0_37 = arith.constant 0 : index
    %c0_38 = arith.constant 0 : index
    %35 = vector.load %arg7[%c0_37, %c0_38] : memref<40x16xf32, #tpu.memory_space<vmem>>, vector<8x16xf32>
    tpu.vector_store %arg7[%c0_37, %c0_38], %34 {strides = array<i32>} : memref<40x16xf32, #tpu.memory_space<vmem>>, vector<8x16xf32>,
    %c0_39 = arith.constant 0 : index
    %c1_40 = arith.constant 1 : index
    %36 = vector.load %arg6[%c0_39, %c1_40] : memref<8x20xf32, #tpu.memory_space<vmem>>, vector<8x16xf32>
    %c8_41 = arith.constant 8 : index
    %c0_42 = arith.constant 0 : index
    %37 = vector.load %arg7[%c8_41, %c0_42] : memref<40x16xf32, #tpu.memory_space<vmem>>, vector<8x16xf32>
    tpu.vector_store %arg7[%c8_41, %c0_42], %36 {strides = array<i32>} : memref<40x16xf32, #tpu.memory_space<vmem>>, vector<8x16xf32>,
    %c0_43 = arith.constant 0 : index
    %c2_44 = arith.constant 2 : index
    %38 = vector.load %arg6[%c0_43, %c2_44] : memref<8x20xf32, #tpu.memory_space<vmem>>, vector<8x16xf32>
    %c16_45 = arith.constant 16 : index
    %c0_46 = arith.constant 0 : index
    %39 = vector.load %arg7[%c16_45, %c0_46] : memref<40x16xf32, #tpu.memory_space<vmem>>, vector<8x16xf32>
    tpu.vector_store %arg7[%c16_45, %c0_46], %38 {strides = array<i32>} : memref<40x16xf32, #tpu.memory_space<vmem>>, vector<8x16xf32>,
    %c0_47 = arith.constant 0 : index
    %c3_48 = arith.constant 3 : index
    %40 = vector.load %arg6[%c0_47, %c3_48] : memref<8x20xf32, #tpu.memory_space<vmem>>, vector<8x16xf32>
    %c24_49 = arith.constant 24 : index
    %c0_50 = arith.constant 0 : index
    %41 = vector.load %arg7[%c24_49, %c0_50] : memref<40x16xf32, #tpu.memory_space<vmem>>, vector<8x16xf32>
    tpu.vector_store %arg7[%c24_49, %c0_50], %40 {strides = array<i32>} : memref<40x16xf32, #tpu.memory_space<vmem>>, vector<8x16xf32>,
    %c0_51 = arith.constant 0 : index
    %c4_52 = arith.constant 4 : index
    %42 = vector.load %arg6[%c0_51, %c4_52] : memref<8x20xf32, #tpu.memory_space<vmem>>, vector<8x16xf32>
    %c32_53 = arith.constant 32 : index
    %c0_54 = arith.constant 0 : index
    %43 = vector.load %arg7[%c32_53, %c0_54] : memref<40x16xf32, #tpu.memory_space<vmem>>, vector<8x16xf32>
    tpu.vector_store %arg7[%c32_53, %c0_54], %42 {strides = array<i32>} : memref<40x16xf32, #tpu.memory_space<vmem>>, vector<8x16xf32>,
    %c0_55 = arith.constant 0 : index
    %c0_56 = arith.constant 0 : index
    %44 = vector.load %arg3[%c0_55, %c0_56] : memref<8x40xf32, #tpu.memory_space<vmem>>, vector<8x40xf32>
    %c0_57 = arith.constant 0 : index
    %c0_58 = arith.constant 0 : index
    %45 = vector.load %arg7[%c0_57, %c0_58] : memref<40x16xf32, #tpu.memory_space<vmem>>, vector<40x16xf32>
    %cst_59 = arith.constant dense<0.000000e+00> : vector<8x16xf32>
    %46 = tpu.matmul %44, %45, %cst_59 {dimension_numbers = #tpu.dot_dimension_numbers<[1], [0], [0], [1], [0, 0, 1, 1], [], []>} : vector<8x40xf32>, vector<40x16xf32>, vector<8x16xf32> -> vector<8x16xf32>
    %c0_60 = arith.constant 0 : index
    %c0_61 = arith.constant 0 : index
    %c0_62 = arith.constant 0 : index
    %47 = vector.load %arg1[%c0_60, %c0_61, %c0_62] : memref<1x8x16xf32, #tpu.memory_space<vmem>>, vector<1x8x16xf32>
    %48 = vector.shape_cast %47 : vector<1x8x16xf32> to vector<8x16xf32>
    %49 = arith.addf %46, %48 : vector<8x16xf32>
    %c0_63 = arith.constant 0 : index
    %c0_64 = arith.constant 0 : index
    %c0_65 = arith.constant 0 : index
    %50 = vector.load %arg5[%c0_63, %c0_64, %c0_65] : memref<1x8x16xf32, #tpu.memory_space<vmem>>, vector<1x8x16xf32>
    %51 = vector.shape_cast %50 : vector<1x8x16xf32> to vector<8x16xf32>
    %52 = vector.shape_cast %49 : vector<8x16xf32> to vector<1x8x16xf32>
    tpu.vector_store %arg5[%c0_63, %c0_64, %c0_65], %52 {strides = array<i32>} : memref<1x8x16xf32, #tpu.memory_space<vmem>>, vector<1x8x16xf32>,
    return
  }
  func.func @transform_0(%arg0: i32) -> (i32, i32, i32) {
    %c0_i32 = arith.constant 0 : i32
    %c0_i32_0 = arith.constant 0 : i32
    %c0_i32_1 = arith.constant 0 : i32
    return %arg0, %c0_i32, %c0_i32_0 : i32, i32, i32
  }
  func.func @transform_1(%arg0: i32) -> (i32, i32) {
    %c0_i32 = arith.constant 0 : i32
    %c0_i32_0 = arith.constant 0 : i32
    %c0_i32_1 = arith.constant 0 : i32
    return %c0_i32, %c0_i32_0 : i32, i32
  }
  func.func @transform_2(%arg0: i32) -> (i32, i32) {
    %c0_i32 = arith.constant 0 : i32
    %c0_i32_0 = arith.constant 0 : i32
    %c0_i32_1 = arith.constant 0 : i32
    return %c0_i32, %c0_i32_0 : i32, i32
  }
  func.func @transform_3(%arg0: i32) -> (i32, i32) {
    %c0_i32 = arith.constant 0 : i32
    %c0_i32_0 = arith.constant 0 : i32
    %c0_i32_1 = arith.constant 0 : i32
    return %c0_i32, %c0_i32_0 : i32, i32
  }
  func.func @transform_4(%arg0: i32) -> (i32, i32, i32) {
    %c0_i32 = arith.constant 0 : i32
    %c0_i32_0 = arith.constant 0 : i32
    %c0_i32_1 = arith.constant 0 : i32
    return %arg0, %c0_i32, %c0_i32_0 : i32, i32, i32
  }
}

module attributes {stable_mosaic.version = 11 : i64} {
  func.func @preact_resblock1d_kernel(%arg0: i32, %arg1: memref<1x8x16xf32, #tpu.memory_space<vmem>>, %arg2: memref<8x40xf32, #tpu.memory_space<vmem>>, %arg3: memref<8x40xf32, #tpu.memory_space<vmem>>, %arg4: memref<8x3xf32, #tpu.memory_space<vmem>>, %arg5: memref<1x8x16xf32, #tpu.memory_space<vmem>>, %arg6: memref<8x20xf32, #tpu.memory_space<vmem>>, %arg7: memref<40x16xf32, #tpu.memory_space<vmem>>) attributes {dimension_semantics = [#tpu.dimension_semantics<parallel>], iteration_bounds = array<i64: 2>, scalar_prefetch = 0 : i64, scratch_operands = 2 : i64, tpu.core_type = #tpu.core_type<tc>, window_params = [{transform_indices = @transform_0, window_bounds = array<i64: 1, 8, 16>}, {pipeline_mode = #tpu.pipeline_mode<synchronous>, transform_indices = @transform_1, window_bounds = array<i64: 8, 40>}, {pipeline_mode = #tpu.pipeline_mode<synchronous>, transform_indices = @transform_2, window_bounds = array<i64: 8, 40>}, {pipeline_mode = #tpu.pipeline_mode<synchronous>, transform_indices = @transform_3, window_bounds = array<i64: 8, 3>}, {transform_indices = @transform_4, window_bounds = array<i64: 1, 8, 16>}]} {
    %c0 = arith.constant 0 : index
    %c0_0 = arith.constant 0 : index
    %0 = vector.load %arg4[%c0, %c0_0] : memref<8x3xf32, #tpu.memory_space<vmem>>, vector<8x1xf32>
    %c0_1 = arith.constant 0 : index
    %c1 = arith.constant 1 : index
    %1 = vector.load %arg4[%c0_1, %c1] : memref<8x3xf32, #tpu.memory_space<vmem>>, vector<8x1xf32>
    %c0_2 = arith.constant 0 : index
    %c2 = arith.constant 2 : index
    %2 = vector.load %arg4[%c0_2, %c2] : memref<8x3xf32, #tpu.memory_space<vmem>>, vector<8x1xf32>
    %cst = arith.constant 0.000000e+00 : f32
    %3 = vector.broadcast %cst : f32 to vector<8x2xf32>
    %c0_3 = arith.constant 0 : index
    %c0_4 = arith.constant 0 : index
    %4 = vector.load %arg6[%c0_3, %c0_4] : memref<8x20xf32, #tpu.memory_space<vmem>>, vector<8x2xf32>
    tpu.vector_store %arg6[%c0_3, %c0_4], %3 {strides = array<i32>} : memref<8x20xf32, #tpu.memory_space<vmem>>, vector<8x2xf32>,
    %cst_5 = arith.constant 0.000000e+00 : f32
    %5 = vector.broadcast %cst_5 : f32 to vector<8x2xf32>
    %c0_6 = arith.constant 0 : index
    %c18 = arith.constant 18 : index
    %6 = vector.load %arg6[%c0_6, %c18] : memref<8x20xf32, #tpu.memory_space<vmem>>, vector<8x2xf32>
    tpu.vector_store %arg6[%c0_6, %c18], %5 {strides = array<i32>} : memref<8x20xf32, #tpu.memory_space<vmem>>, vector<8x2xf32>,
    %c0_7 = arith.constant 0 : index
    %c0_8 = arith.constant 0 : index
    %c0_9 = arith.constant 0 : index
    %7 = vector.load %arg1[%c0_7, %c0_8, %c0_9] : memref<1x8x16xf32, #tpu.memory_space<vmem>>, vector<1x8x16xf32>
    %8 = vector.shape_cast %7 : vector<1x8x16xf32> to vector<8x16xf32>
    %9 = vector.broadcast %0 : vector<8x1xf32> to vector<8x16xf32>
    %10 = arith.mulf %8, %9 : vector<8x16xf32>
    %11 = vector.broadcast %1 : vector<8x1xf32> to vector<8x16xf32>
    %12 = arith.addf %10, %11 : vector<8x16xf32>
    %cst_10 = arith.constant 0.000000e+00 : f32
    %13 = vector.broadcast %cst_10 : f32 to vector<8x16xf32>
    %14 = arith.maximumf %12, %13 : vector<8x16xf32>
    %c0_11 = arith.constant 0 : index
    %c2_12 = arith.constant 2 : index
    %15 = vector.load %arg6[%c0_11, %c2_12] : memref<8x20xf32, #tpu.memory_space<vmem>>, vector<8x16xf32>
    tpu.vector_store %arg6[%c0_11, %c2_12], %14 {strides = array<i32>} : memref<8x20xf32, #tpu.memory_space<vmem>>, vector<8x16xf32>,
    %c0_13 = arith.constant 0 : index
    %c0_14 = arith.constant 0 : index
    %16 = vector.load %arg6[%c0_13, %c0_14] : memref<8x20xf32, #tpu.memory_space<vmem>>, vector<8x16xf32>
    %c0_15 = arith.constant 0 : index
    %c0_16 = arith.constant 0 : index
    %17 = vector.load %arg7[%c0_15, %c0_16] : memref<40x16xf32, #tpu.memory_space<vmem>>, vector<8x16xf32>
    tpu.vector_store %arg7[%c0_15, %c0_16], %16 {strides = array<i32>} : memref<40x16xf32, #tpu.memory_space<vmem>>, vector<8x16xf32>,
    %c0_17 = arith.constant 0 : index
    %c1_18 = arith.constant 1 : index
    %18 = vector.load %arg6[%c0_17, %c1_18] : memref<8x20xf32, #tpu.memory_space<vmem>>, vector<8x16xf32>
    %c8 = arith.constant 8 : index
    %c0_19 = arith.constant 0 : index
    %19 = vector.load %arg7[%c8, %c0_19] : memref<40x16xf32, #tpu.memory_space<vmem>>, vector<8x16xf32>
    tpu.vector_store %arg7[%c8, %c0_19], %18 {strides = array<i32>} : memref<40x16xf32, #tpu.memory_space<vmem>>, vector<8x16xf32>,
    %c0_20 = arith.constant 0 : index
    %c2_21 = arith.constant 2 : index
    %20 = vector.load %arg6[%c0_20, %c2_21] : memref<8x20xf32, #tpu.memory_space<vmem>>, vector<8x16xf32>
    %c16 = arith.constant 16 : index
    %c0_22 = arith.constant 0 : index
    %21 = vector.load %arg7[%c16, %c0_22] : memref<40x16xf32, #tpu.memory_space<vmem>>, vector<8x16xf32>
    tpu.vector_store %arg7[%c16, %c0_22], %20 {strides = array<i32>} : memref<40x16xf32, #tpu.memory_space<vmem>>, vector<8x16xf32>,
    %c0_23 = arith.constant 0 : index
    %c3 = arith.constant 3 : index
    %22 = vector.load %arg6[%c0_23, %c3] : memref<8x20xf32, #tpu.memory_space<vmem>>, vector<8x16xf32>
    %c24 = arith.constant 24 : index
    %c0_24 = arith.constant 0 : index
    %23 = vector.load %arg7[%c24, %c0_24] : memref<40x16xf32, #tpu.memory_space<vmem>>, vector<8x16xf32>
    tpu.vector_store %arg7[%c24, %c0_24], %22 {strides = array<i32>} : memref<40x16xf32, #tpu.memory_space<vmem>>, vector<8x16xf32>,
    %c0_25 = arith.constant 0 : index
    %c4 = arith.constant 4 : index
    %24 = vector.load %arg6[%c0_25, %c4] : memref<8x20xf32, #tpu.memory_space<vmem>>, vector<8x16xf32>
    %c32 = arith.constant 32 : index
    %c0_26 = arith.constant 0 : index
    %25 = vector.load %arg7[%c32, %c0_26] : memref<40x16xf32, #tpu.memory_space<vmem>>, vector<8x16xf32>
    tpu.vector_store %arg7[%c32, %c0_26], %24 {strides = array<i32>} : memref<40x16xf32, #tpu.memory_space<vmem>>, vector<8x16xf32>,
    %c0_27 = arith.constant 0 : index
    %c0_28 = arith.constant 0 : index
    %26 = vector.load %arg2[%c0_27, %c0_28] : memref<8x40xf32, #tpu.memory_space<vmem>>, vector<8x40xf32>
    %c0_29 = arith.constant 0 : index
    %c0_30 = arith.constant 0 : index
    %27 = vector.load %arg7[%c0_29, %c0_30] : memref<40x16xf32, #tpu.memory_space<vmem>>, vector<40x16xf32>
    %cst_31 = arith.constant dense<0.000000e+00> : vector<8x16xf32>
    %28 = tpu.matmul %26, %27, %cst_31 {dimension_numbers = #tpu.dot_dimension_numbers<[1], [0], [0], [1], [0, 0, 1, 1], [], []>} : vector<8x40xf32>, vector<40x16xf32>, vector<8x16xf32> -> vector<8x16xf32>
    %29 = vector.broadcast %2 : vector<8x1xf32> to vector<8x16xf32>
    %30 = arith.addf %28, %29 : vector<8x16xf32>
    %cst_32 = arith.constant 0.000000e+00 : f32
    %31 = vector.broadcast %cst_32 : f32 to vector<8x16xf32>
    %32 = arith.maximumf %30, %31 : vector<8x16xf32>
    %c0_33 = arith.constant 0 : index
    %c2_34 = arith.constant 2 : index
    %33 = vector.load %arg6[%c0_33, %c2_34] : memref<8x20xf32, #tpu.memory_space<vmem>>, vector<8x16xf32>
    tpu.vector_store %arg6[%c0_33, %c2_34], %32 {strides = array<i32>} : memref<8x20xf32, #tpu.memory_space<vmem>>, vector<8x16xf32>,
    %c0_35 = arith.constant 0 : index
    %c0_36 = arith.constant 0 : index
    %34 = vector.load %arg6[%c0_35, %c0_36] : memref<8x20xf32, #tpu.memory_space<vmem>>, vector<8x16xf32>
    %c0_37 = arith.constant 0 : index
    %c0_38 = arith.constant 0 : index
    %35 = vector.load %arg7[%c0_37, %c0_38] : memref<40x16xf32, #tpu.memory_space<vmem>>, vector<8x16xf32>
    tpu.vector_store %arg7[%c0_37, %c0_38], %34 {strides = array<i32>} : memref<40x16xf32, #tpu.memory_space<vmem>>, vector<8x16xf32>,
    %c0_39 = arith.constant 0 : index
    %c1_40 = arith.constant 1 : index
    %36 = vector.load %arg6[%c0_39, %c1_40] : memref<8x20xf32, #tpu.memory_space<vmem>>, vector<8x16xf32>
    %c8_41 = arith.constant 8 : index
    %c0_42 = arith.constant 0 : index
    %37 = vector.load %arg7[%c8_41, %c0_42] : memref<40x16xf32, #tpu.memory_space<vmem>>, vector<8x16xf32>
    tpu.vector_store %arg7[%c8_41, %c0_42], %36 {strides = array<i32>} : memref<40x16xf32, #tpu.memory_space<vmem>>, vector<8x16xf32>,
    %c0_43 = arith.constant 0 : index
    %c2_44 = arith.constant 2 : index
    %38 = vector.load %arg6[%c0_43, %c2_44] : memref<8x20xf32, #tpu.memory_space<vmem>>, vector<8x16xf32>
    %c16_45 = arith.constant 16 : index
    %c0_46 = arith.constant 0 : index
    %39 = vector.load %arg7[%c16_45, %c0_46] : memref<40x16xf32, #tpu.memory_space<vmem>>, vector<8x16xf32>
    tpu.vector_store %arg7[%c16_45, %c0_46], %38 {strides = array<i32>} : memref<40x16xf32, #tpu.memory_space<vmem>>, vector<8x16xf32>,
    %c0_47 = arith.constant 0 : index
    %c3_48 = arith.constant 3 : index
    %40 = vector.load %arg6[%c0_47, %c3_48] : memref<8x20xf32, #tpu.memory_space<vmem>>, vector<8x16xf32>
    %c24_49 = arith.constant 24 : index
    %c0_50 = arith.constant 0 : index
    %41 = vector.load %arg7[%c24_49, %c0_50] : memref<40x16xf32, #tpu.memory_space<vmem>>, vector<8x16xf32>
    tpu.vector_store %arg7[%c24_49, %c0_50], %40 {strides = array<i32>} : memref<40x16xf32, #tpu.memory_space<vmem>>, vector<8x16xf32>,
    %c0_51 = arith.constant 0 : index
    %c4_52 = arith.constant 4 : index
    %42 = vector.load %arg6[%c0_51, %c4_52] : memref<8x20xf32, #tpu.memory_space<vmem>>, vector<8x16xf32>
    %c32_53 = arith.constant 32 : index
    %c0_54 = arith.constant 0 : index
    %43 = vector.load %arg7[%c32_53, %c0_54] : memref<40x16xf32, #tpu.memory_space<vmem>>, vector<8x16xf32>
    tpu.vector_store %arg7[%c32_53, %c0_54], %42 {strides = array<i32>} : memref<40x16xf32, #tpu.memory_space<vmem>>, vector<8x16xf32>,
    %c0_55 = arith.constant 0 : index
    %c0_56 = arith.constant 0 : index
    %44 = vector.load %arg3[%c0_55, %c0_56] : memref<8x40xf32, #tpu.memory_space<vmem>>, vector<8x40xf32>
    %c0_57 = arith.constant 0 : index
    %c0_58 = arith.constant 0 : index
    %45 = vector.load %arg7[%c0_57, %c0_58] : memref<40x16xf32, #tpu.memory_space<vmem>>, vector<40x16xf32>
    %cst_59 = arith.constant dense<0.000000e+00> : vector<8x16xf32>
    %46 = tpu.matmul %44, %45, %cst_59 {dimension_numbers = #tpu.dot_dimension_numbers<[1], [0], [0], [1], [0, 0, 1, 1], [], []>} : vector<8x40xf32>, vector<40x16xf32>, vector<8x16xf32> -> vector<8x16xf32>
    %c0_60 = arith.constant 0 : index
    %c0_61 = arith.constant 0 : index
    %c0_62 = arith.constant 0 : index
    %47 = vector.load %arg1[%c0_60, %c0_61, %c0_62] : memref<1x8x16xf32, #tpu.memory_space<vmem>>, vector<1x8x16xf32>
    %48 = vector.shape_cast %47 : vector<1x8x16xf32> to vector<8x16xf32>
    %49 = arith.addf %46, %48 : vector<8x16xf32>
    %c0_63 = arith.constant 0 : index
    %c0_64 = arith.constant 0 : index
    %c0_65 = arith.constant 0 : index
    %50 = vector.load %arg5[%c0_63, %c0_64, %c0_65] : memref<1x8x16xf32, #tpu.memory_space<vmem>>, vector<1x8x16xf32>
    %51 = vector.shape_cast %50 : vector<1x8x16xf32> to vector<8x16xf32>
    %52 = vector.shape_cast %49 : vector<8x16xf32> to vector<1x8x16xf32>
    tpu.vector_store %arg5[%c0_63, %c0_64, %c0_65], %52 {strides = array<i32>} : memref<1x8x16xf32, #tpu.memory_space<vmem>>, vector<1x8x16xf32>,
    return
  }
  func.func @transform_0(%arg0: i32) -> (i32, i32, i32) {
    %c0_i32 = arith.constant 0 : i32
    %c0_i32_0 = arith.constant 0 : i32
    %c0_i32_1 = arith.constant 0 : i32
    return %arg0, %c0_i32, %c0_i32_0 : i32, i32, i32
  }
  func.func @transform_1(%arg0: i32) -> (i32, i32) {
    %c0_i32 = arith.constant 0 : i32
    %c0_i32_0 = arith.constant 0 : i32
    %c0_i32_1 = arith.constant 0 : i32
    return %c0_i32, %c0_i32_0 : i32, i32
  }
  func.func @transform_2(%arg0: i32) -> (i32, i32) {
    %c0_i32 = arith.constant 0 : i32
    %c0_i32_0 = arith.constant 0 : i32
    %c0_i32_1 = arith.constant 0 : i32
    return %c0_i32, %c0_i32_0 : i32, i32
  }
  func.func @transform_3(%arg0: i32) -> (i32, i32) {
    %c0_i32 = arith.constant 0 : i32
    %c0_i32_0 = arith.constant 0 : i32
    %c0_i32_1 = arith.constant 0 : i32
    return %c0_i32, %c0_i32_0 : i32, i32
  }
  func.func @transform_4(%arg0: i32) -> (i32, i32, i32) {
    %c0_i32 = arith.constant 0 : i32
    %c0_i32_0 = arith.constant 0 : i32
    %c0_i32_1 = arith.constant 0 : i32
    return %arg0, %c0_i32, %c0_i32_0 : i32, i32, i32
  }
}

</mosaic_0001>

<bundles_post_ra>
// kernel: tpu_custom_call.1
= control target key start
LH: loop header
LB: loop body
LE: loop exit
PB: predicated region body
PF: predicated region fallthrough
CT: control target
= control target key end

     0   :  { %9 = vsyncpa [#allocation5], 0  ;;  %s1018_s0 = inlined_call_operand.hbm [shape: f32[2,8,16], index: 0, kind: input, shape index: {}]   ;;  %s1019_s1 = inlined_call_operand.vmem [shape: f32[8,40], index: 1, kind: input, shape index: {}]   ;;  %s1020_s2 = inlined_call_operand.vmem [shape: f32[8,40], index: 2, kind: input, shape index: {}]   ;;  %s1021_s3 = inlined_call_operand.vmem [shape: f32[8,3], index: 3, kind: input, shape index: {}]   ;;  %s1022_s4 = inlined_call_operand.hbm [shape: f32[2,8,16], index: 4, kind: output, shape index: {}]  }
   0x1   :  { %11 = vsyncpa [#allocation5 + $0x1], 0 }
   0x2   :  { %12 = vsyncpa [#allocation6], 0 }
   0x3   :  { %14 = vsyncpa [#allocation6 + $0x1], 0  ;;  %s805_s15 = smov 0   ;;  %s807_s16 = smov 0  }
   0x4   :  { %s809_s17 = smov 0   ;;  %s811_s18 = smov 0  }
   0x5 LB: > { %s826_s19 = sadd.s32 4294967295, %s765_s18   ;;  %s545_s20 = sadd.s32 4294967294, %s765_s18   ;;  %s765_s18 = sphi %s811_s18, %s1037_s18   ;;  %s761_s17 = sphi %s809_s17, %s1036_s17   ;;  %s757_s16 = sphi %s807_s16, %s1035_s16   ;;  %s753_s15 = sphi %s805_s15, %s1034_s15  }
   0x6   : > { %s830_s21 = sadd.s32 1, %s765_s18   ;;  %s27_s22 = sadd.s32 1, %s761_s17 }
   0x7   : > { %s24_s23 = ssub.s32 %s765_s18, %s830_s21  ;;  %p34_p0 = scmp.ne.s32.totalorder %s761_s17, %s757_s16 }
   0x8   : > { %p25_p1 = scmp.eq.s32.totalorder %s24_s23, 0  ;;  %p35_p2 = scmp.eq.s32.totalorder %s765_s18, 0 }
   0x9   : > { %p40_p3 = scmp.ne.s32.totalorder %s757_s16, %s753_s15  ;;  %p41_p4 = scmp.eq.s32.totalorder %s826_s19, 0 }
   0xa   : > { %s842_s24 = scalar_select %p25_p1, %s761_s17, %s27_s22  }
   0xb   : > { %p844_p5 = por %p35_p2, %p34_p0  ;;  %p848_p6 = por %p41_p4, %p40_p3 }
   0xc   : > { %p127_p7 = scmp.eq.s32.totalorder %s826_s19, 1  ;;  %p133_p8 = scmp.eq.s32.totalorder %s545_s20, 1 }
   0xd   : > { %p621_p10 = scmp.lt.s32.totalorder %s765_s18, 2  ;;  %s162_s29 = sand.u32 1, %s761_s17  }
   0xe   : > { %p855_p11 = por %p127_p7, %p34_p0  ;;  %p859_p12 = por %p133_p8, %p40_p3 }
   0xf   : > { %s549_s30 = sshll.u32 %s765_s18, 7  ;;  %s548_s5 = sshll.u32 %s162_s29, 3 }
  0x10   : > { %s1026_s27 = scalar_select %p855_p11, 1, 0 }
  0x11   : > { %s1027_s28 = scalar_select %p859_p12, 1, 0 }
  0x12   : > { %s868_s8 = scalar_lea.hbm %s1018_s0, %s549_s30  ;;  %s166_s9 = scalar_lea.vmem [#allocation4], %s548_s5 }
  0x13   : > { %s173_s10 = sshll.u32 %s166_s9, 4  ;;  %p872_p13 = pnand %p621_p10, %p844_p5  ;;  %s876_s10 = int_to_ptr.vmem [resolvable:$true] %s173_s10 }
  0x14   : > { %s163_s12 = scalar_lea.sflag [#allocation5], %s162_s29  ;;  %s669_s13 = scalar_lea.hbm %s868_s8, 128 }
  0x15   : > { %p670_p2 = scmp.ne.s32.totalorder %s868_s8, %s669_s13  ;;  %p671_p3 = pneg %p872_p13 }
  0x16   : > { %s674_s22 = scalar_lea.hbm %s1018_s0, 256  ;;  %p675_p5 = scmp.lt.u32.totalorder %s868_s8, %s1018_s0 }
  0x17   : > { %p672_p4 = pnand %p671_p3, %p670_p2  ;;  %p676_p8 = scmp.lt.u32.totalorder %s674_s22, %s669_s13 }
  0x18   : > { %p678_p9 = scmp.lt.u32.totalorder %s669_s13, %s868_s8 }
  0x19   : > { %p673_p7 = pneg %p672_p4  ;;  %p677_p10 = por %p676_p8, %p675_p5 }
  0x1b   : > { %p679_p0 = por %p678_p9, %p677_p10 }
  0x1d   : > { %p680_p1 = pnand %p679_p0, %p673_p7 }
  0x1f   : > { %683 = shalt.err (!%p680_p1)
}
  0x20   : > { %s684_s29 = scalar_lea.vmem %s876_s10, 128  ;;  %s767_s30 = smov [#allocation4]  }
  0x21   : > { %p685_p2 = scmp.ne.s32.totalorder %s876_s10, %s684_s29  ;;  %s689_s5 = sshll.u32 %s767_s30, 4  ;;  %s690_s5 = int_to_ptr.vmem [resolvable:$false] %s689_s5 }
  0x22   : > { %s691_s6 = scalar_lea.vmem %s690_s5, 256  ;;  %p692_p11 = scmp.lt.s32.totalorder %s876_s10, %s690_s5 }
  0x23   : > { %p687_p4 = pnand %p685_p2, %p671_p3  ;;  %p693_p5 = scmp.lt.s32.totalorder %s691_s6, %s684_s29 }
  0x25   : > { %p688_p12 = pneg %p687_p4  ;;  %p694_p8 = por %p693_p5, %p692_p11 }
  0x27   : > { %p695_p9 = pnand %p694_p8, %p688_p12 }
  0x29   : > { %698 = shalt.err (!%p695_p9)
}
  0x2a   : > { %616 = dma.hbm_to_vmem [thread:$0]  (!%p872_p13), %s868_s8, 128, %s876_s10, %s163_s12  }
  0x2b   : > { %p1029_p0 = scmp.lt.s32.totalorder %s765_s18, 3  ;;  %p1030_p1 = scmp.ge.s32.totalorder %s765_s18, 1 }
  0x2d   : > { %p179_p3 = pnand %p1030_p1, %p1029_p0 }
  0x2e   : > { %s910_s7 = sand.u32 (!%p179_p3), 1, %s757_s16  }
  0x2f   : > { %182 = sbr.rel (%p179_p3) target bundleno = 1152 (0x480), region = 36  ;;  %s551_s9 = sshll.u32 (!%p179_p3), %s910_s7, 3 }
  0x30   : > { %s185_s13 = scalar_lea.sflag (!%p179_p3), [#allocation5], %s910_s7  ;;  %s188_s11 = scalar_lea.vmem (!%p179_p3), [#allocation4], %s551_s9 }
  0x36   : > { %744 = dma.done.wait (%p848_p6), %s185_s13, 128  }
  0x37   : > { %746 = vsyncadd (%p848_p6), %s185_s13, 4294967168  ;;  %v768_v0 = vmov 0   ;;  %v213_v1 = vld [vmem:[%s1021_s3] sm:$0xff]  ;;  %v769_v2 = vmov 1   ;;  %vm214_vm0 = vcmask 15360   ;;  %vm216_vm1 = vcmask 162960  }
  0x38   : > { %666 = vset.pattern.permute.xlu0 %v768_v0  ;;  %v770_v3 = vmov 0.0   ;;  %v925_v5 = vld [vmem:[%s188_s11] sm:$0xff]  ;;  %s771_s26 = smov 2   ;;  %vm235_vm2 = vcmask 146448   ;;  %v772_v11 = vmov 0.0|0.0   ;;  %vm238_vm3 = vcmask 130048  }
  0x39   : > { %221 = vperm.xlu0 %666, %v213_v1   ;;  %215 = vst.msk [vmem:[#allocation2] sm:$0xff] %vm214_vm0, %v770_v3  ;;  %597 = vmatprep.subr.bf16.mxu0 %v772_v11  ;;  %s773_s12 = smov 125   ;;  %s774_s14 = smov 127   ;;  %vm776_vm4 = vmmov 0   ;;  %v777_v13 = vmov 2   ;;  %v264_v24 = vld [vmem:[%s1019_s1] sm:$0xff] }
  0x3a   : > { %217 = vst.msk [vmem:[#allocation2] sm:$0xff] %vm216_vm1, %v770_v3  ;;  %603 = vmatprep.subr.bf16.mxu1 %v772_v11  ;;  %s775_s20 = smov 126   ;;  %581 = vmatprep.mubr.msk.f32.mxu0 %vm776_vm4, %v770_v3  ;;  %s778_s22 = smov 124   ;;  %vm274_vm5 = vcmask 326656   ;;  %v380_v43 = vld [vmem:[%s1020_s2] sm:$0xff] }
  0x3b   : > { %594 = vmatprep.mubr.msk.f32.mxu1 %vm776_vm4, %v770_v3  ;;  %s556_s5 = sshll.u32 %s826_s19, 7  ;;  %s212_s6 = scalar_lea.vmem [#allocation7], %s551_s9 }
  0x3c   : > { %s475_s13 = sshll.u32 %s212_s6, 4  ;;  %s973_s10 = scalar_lea.hbm %s1022_s4, %s556_s5  ;;  %s975_s13 = int_to_ptr.vmem [resolvable:$true] %s475_s13 }
  0x3d   : > { %667 = vset.pattern.permute.xlu0 %v769_v2  ;;  %s462_s19 = scalar_lea.sflag [#allocation6], %s910_s7  ;;  %p1031_p11 = scmp.ne.s32.totalorder %s1026_s27, 0 }
  0x3e   : > { %226 = vperm.xlu0 %667, %v213_v1   ;;  %s779_s9 = smov [#allocation7]  }
  0x42   : > { %668 = vset.pattern.permute.xlu0 %v777_v13 }
  0xb8   : > { %v222_v4 = vpop.permute.xlu0 %221 }
  0xb9   : > { %v224_v6 = vmul.f32 %v222_v4, %v925_v5 }
  0xbd   : > { %v227_v7 = vpop.permute.xlu0 %226 }
  0xbe   : > { %v229_v8 = vadd.f32 %v227_v7, %v224_v6 }
  0xc0   : > { %v230_v9 = vmax.f32 %v229_v8, 0.0 }
  0xc2   : > { %232 = vrot.lane.b32.xlu1 %v230_v9, %s771_s26 }
 0x134   : > { %v233_v10 = vpop.permute.xlu1 %232 }
 0x135   : > { %236 = vst.msk [vmem:[#allocation2] sm:$0xff] %vm235_vm2, %v233_v10 }
 0x13c   : > { %v237_v12 = vld [vmem:[#allocation2] sm:$0xff] }
 0x13d   : > { %254 = vrot.lane.b32.xlu0 %v237_v12, %s773_s12  ;;  %242 = vrot.lane.b32.xlu1 %v237_v12, %s774_s14  ;;  %239 = vst.msk [vmem:[#allocation3] sm:$0xff] %vm238_vm3, %v237_v12 }
 0x141   : > { %248 = vrot.lane.b32.xlu1 %v237_v12, %s775_s20  ;;  %271 = vperm.xlu0 %668, %v213_v1  }
 0x144   : > { %v265_v18 = vld [vmem:[#allocation3] sm:$0xff] }
 0x145   : > { %260 = vrot.lane.b32.xlu1 %v237_v12, %s778_s22 }
 0x1af   : > { %v255_v14 = vpop.permute.xlu0 %254  ;;  %v243_v15 = vpop.permute.xlu1 %242 }
 0x1b0   : > { %257 = vst.msk [vmem:[#allocation3 + $0x18] sm:$0xff] %vm238_vm3, %v255_v14  ;;  %245 = vst.msk [vmem:[#allocation3 + $0x8] sm:$0xff] %vm238_vm3, %v243_v15 }
 0x1b3   : > { %v249_v16 = vpop.permute.xlu1 %248 }
 0x1b4   : > { %251 = vst.msk [vmem:[#allocation3 + $0x10] sm:$0xff] %vm238_vm3, %v249_v16 }
 0x1b7   : > { %v261_v17 = vpop.permute.xlu1 %260  ;;  %v266_v19 = vld [vmem:[#allocation3 + $0x8] sm:$0xff]  ;;  %v268_v22 = vld [vmem:[#allocation3 + $0x18] sm:$0xff] }
 0x1b8   : > { %263 = vst.msk [vmem:[#allocation3 + $0x20] sm:$0xff] %vm238_vm3, %v261_v17  ;;  %v598_v20 = vpack.c.bf16 %v266_v19, %v265_v18 }
 0x1ba   : > { %599 = vmatpush3.bf16.msra.mxu0 %v598_v20 }
 0x1bb   : > { %600 = vmatprep.subr.bf16.mxu0 %v772_v11  ;;  %v267_v21 = vld [vmem:[#allocation3 + $0x10] sm:$0xff] }
 0x1bc   : > { %v601_v23 = vpack.c.bf16 %v268_v22, %v267_v21 }
 0x1be   : > { %602 = vmatpush3.bf16.msra.mxu0 %v601_v23 }
 0x1bf   : > { %579 = vmatprep.subr.mxu0 %v770_v3  ;;  %v269_v25 = vld [vmem:[#allocation3 + $0x20] sm:$0xff] }
 0x1c0   : > { %v272_v26 = vpop.permute.xlu0 %271 }
 0x1c2   : > { %580 = vmatpush3.msra.mxu0 %v269_v25 }
 0x1c3   : > { %582 = vmatmul.mubr.msk.f32.vlgmr.msra.gmra.mrb[0].mxu0 %vm274_vm5, %v264_v24 }
 0x296   : > { %v344_v27 = vpop.f32.mrb[0].mxu0 }
 0x297   : > { %v345_v28 = vadd.f32 %v344_v27, %v272_v26  ;;  %v583_v29 = vpop.f32.mrb[1].mxu0 }
 0x299   : > { %v348_v30 = vmax.f32 %v345_v28, 0.0 }
 0x29b   : > { %350 = vrot.lane.b32.xlu1 %v348_v30, %s771_s26  ;;  %s699_s26 = scalar_lea.vmem %s975_s13, 128 }
 0x29c   : > { %p700_p6 = scmp.ne.s32.totalorder %s975_s13, %s699_s26 }
 0x29e   : > { %p701_p12 = pnand %p700_p6, %p1031_p11 }
 0x2a0   : > { %p702_p13 = pneg %p701_p12 }
 0x30d   : > { %v351_v31 = vpop.permute.xlu1 %350 }
 0x30e   : > { %353 = vst.msk [vmem:[#allocation2] sm:$0xff] %vm235_vm2, %v351_v31 }
 0x315   : > { %v362_v32 = vld [vmem:[#allocation2] sm:$0xff] }
 0x316   : > { %364 = vrot.lane.b32.xlu0 %v362_v32, %s775_s20  ;;  %358 = vrot.lane.b32.xlu1 %v362_v32, %s774_s14  ;;  %355 = vst.msk [vmem:[#allocation3] sm:$0xff] %vm238_vm3, %v362_v32 }
 0x31a   : > { %376 = vrot.lane.b32.xlu0 %v362_v32, %s778_s22  ;;  %370 = vrot.lane.b32.xlu1 %v362_v32, %s773_s12  ;;  %s703_s12 = sshll.u32 %s779_s9, 4  ;;  %s704_s12 = int_to_ptr.vmem [resolvable:$false] %s703_s12 }
 0x31b   : > { %s705_s14 = scalar_lea.vmem %s704_s12, 256  ;;  %p706_p7 = scmp.lt.s32.totalorder %s975_s13, %s704_s12 }
 0x31c   : > { %p707_p10 = scmp.lt.s32.totalorder %s705_s14, %s699_s26 }
 0x31d   : > { %v381_v37 = vld [vmem:[#allocation3] sm:$0xff] }
 0x31e   : > { %p708_p2 = por %p707_p10, %p706_p7 }
 0x320   : > { %p709_p4 = pnand %p708_p2, %p702_p13 }
 0x388   : > { %v365_v33 = vpop.permute.xlu0 %364  ;;  %v359_v34 = vpop.permute.xlu1 %358 }
 0x389   : > { %367 = vst.msk [vmem:[#allocation3 + $0x10] sm:$0xff] %vm238_vm3, %v365_v33  ;;  %361 = vst.msk [vmem:[#allocation3 + $0x8] sm:$0xff] %vm238_vm3, %v359_v34 }
 0x38c   : > { %v377_v35 = vpop.permute.xlu0 %376  ;;  %v371_v36 = vpop.permute.xlu1 %370 }
 0x38d   : > { %379 = vst.msk [vmem:[#allocation3 + $0x20] sm:$0xff] %vm238_vm3, %v377_v35  ;;  %373 = vst.msk [vmem:[#allocation3 + $0x18] sm:$0xff] %vm238_vm3, %v371_v36 }
 0x390   : > { %v382_v38 = vld [vmem:[#allocation3 + $0x8] sm:$0xff]  ;;  %v383_v40 = vld [vmem:[#allocation3 + $0x10] sm:$0xff] }
 0x391   : > { %v604_v39 = vpack.c.bf16 %v382_v38, %v381_v37 }
 0x393   : > { %605 = vmatpush3.bf16.msra.mxu1 %v604_v39 }
 0x394   : > { %606 = vmatprep.subr.bf16.mxu1 %v772_v11  ;;  %v384_v41 = vld [vmem:[#allocation3 + $0x18] sm:$0xff]  ;;  %v385_v44 = vld [vmem:[#allocation3 + $0x20] sm:$0xff] }
 0x395   : > { %v607_v42 = vpack.c.bf16 %v384_v41, %v383_v40 }
 0x397   : > { %608 = vmatpush3.bf16.msra.mxu1 %v607_v42 }
 0x398   : > { %592 = vmatprep.subr.mxu1 %v770_v3 }
 0x39b   : > { %593 = vmatpush3.msra.mxu1 %v385_v44 }
 0x39c   : > { %595 = vmatmul.mubr.msk.f32.vlgmr.msra.gmra.mrb[0].mxu1 %vm274_vm5, %v380_v43 }
 0x46f   : > { %v456_v45 = vpop.f32.mrb[0].mxu1 }
 0x470   : > { %v457_v46 = vadd.f32 %v456_v45, %v925_v5  ;;  %v596_v47 = vpop.f32.mrb[1].mxu1 }
 0x472   : > { %460 = vst.msk [vmem:[%s212_s6] sm:$0xff] %vm238_vm3, %v457_v46 }
 0x473   : > { %712 = shalt.err (!%p709_p4)
}
 0x474   : > { %s713_s7 = scalar_lea.hbm %s973_s10, 128  ;;  %s717_s23 = scalar_lea.hbm %s1022_s4, 256 }
 0x475   : > { %p714_p5 = scmp.ne.s32.totalorder %s973_s10, %s713_s7  ;;  %p718_p0 = scmp.lt.u32.totalorder %s973_s10, %s1022_s4 }
 0x476   : > { %p719_p1 = scmp.lt.u32.totalorder %s717_s23, %s713_s7  ;;  %p721_p6 = scmp.lt.u32.totalorder %s713_s7, %s973_s10 }
 0x477   : > { %p715_p8 = pnand %p714_p5, %p1031_p11 }
 0x478   : > { %p720_p3 = por %p719_p1, %p718_p0 }
 0x479   : > { %p716_p9 = pneg %p715_p8 }
 0x47a   : > { %p722_p12 = por %p721_p6, %p720_p3 }
 0x47c   : > { %p723_p13 = pnand %p722_p12, %p716_p9 }
 0x47e   : > { %726 = shalt.err (!%p723_p13)
}
 0x47f   : > { %611 = dma.vmem_to_hbm [thread:$0]  (%p1031_p11), %s975_s13, 128, %s973_s10, %s462_s19  }
 0x480 PF: > { %s487_s30 = sand.u32 1, %s753_s15   ;;  %p1032_p7 = scmp.ne.s32.totalorder %s1027_s28, 0 }
 0x481   : > { %p1033_p10 = scmp.ge.s32.totalorder %s765_s18, 2  ;;  %s488_s5 = scalar_lea.sflag [#allocation6], %s487_s30 }
 0x483   : > { %p618_p2 = pnand %p1033_p10, %p1032_p7 }
 0x485   : > { %748 = dma.done.wait (!%p618_p2), %s488_s5, 128  }
 0x486   : > { %750 = vsyncadd (!%p618_p2), %s488_s5, 4294967168  ;;  %p17_p4 = scmp.ge.s32.totalorder %s830_s21, 4   ;;  %s1034_s15 = smov %s757_s16 }
 0x487   : > { %s1035_s16 = smov %s761_s17  ;;  %s1036_s17 = smov %s842_s24 }
 0x488   : > { %s1037_s18 = smov %s830_s21  ;;  %19 = sbr.rel (!%p17_p4) target bundleno = 5 (0x5), region = 81 }
 0x48f   :  { %493 = vsyncpa [#allocation5], 1 }
 0x490   :  { %495 = vsyncpa [#allocation5 + $0x1], 1 }
 0x491   :  { %496 = vsyncpa [#allocation6], 1 }
 0x492   :  { %498 = vsyncpa [#allocation6 + $0x1], 1 }

// kernel: tpu_custom_call.1
= control target key start
LH: loop header
LB: loop body
LE: loop exit
PB: predicated region body
PF: predicated region fallthrough
CT: control target
= control target key end

     0   :  { %9 = vsyncpa [#allocation5], 0  ;;  %s1018_s0 = inlined_call_operand.hbm [shape: f32[2,8,16], index: 0, kind: input, shape index: {}]   ;;  %s1019_s1 = inlined_call_operand.vmem [shape: f32[8,40], index: 1, kind: input, shape index: {}]   ;;  %s1020_s2 = inlined_call_operand.vmem [shape: f32[8,40], index: 2, kind: input, shape index: {}]   ;;  %s1021_s3 = inlined_call_operand.vmem [shape: f32[8,3], index: 3, kind: input, shape index: {}]   ;;  %s1022_s4 = inlined_call_operand.hbm [shape: f32[2,8,16], index: 4, kind: output, shape index: {}]  }
   0x1   :  { %11 = vsyncpa [#allocation5 + $0x1], 0 }
   0x2   :  { %12 = vsyncpa [#allocation6], 0 }
   0x3   :  { %14 = vsyncpa [#allocation6 + $0x1], 0  ;;  %s805_s15 = smov 0   ;;  %s807_s16 = smov 0  }
   0x4   :  { %s809_s17 = smov 0   ;;  %s811_s18 = smov 0  }
   0x5 LB: > { %s826_s19 = sadd.s32 4294967295, %s765_s18   ;;  %s545_s20 = sadd.s32 4294967294, %s765_s18   ;;  %s765_s18 = sphi %s811_s18, %s1037_s18   ;;  %s761_s17 = sphi %s809_s17, %s1036_s17   ;;  %s757_s16 = sphi %s807_s16, %s1035_s16   ;;  %s753_s15 = sphi %s805_s15, %s1034_s15  }
   0x6   : > { %s830_s21 = sadd.s32 1, %s765_s18   ;;  %s27_s22 = sadd.s32 1, %s761_s17 }
   0x7   : > { %s24_s23 = ssub.s32 %s765_s18, %s830_s21  ;;  %p34_p0 = scmp.ne.s32.totalorder %s761_s17, %s757_s16 }
   0x8   : > { %p25_p1 = scmp.eq.s32.totalorder %s24_s23, 0  ;;  %p35_p2 = scmp.eq.s32.totalorder %s765_s18, 0 }
   0x9   : > { %p40_p3 = scmp.ne.s32.totalorder %s757_s16, %s753_s15  ;;  %p41_p4 = scmp.eq.s32.totalorder %s826_s19, 0 }
   0xa   : > { %s842_s24 = scalar_select %p25_p1, %s761_s17, %s27_s22  }
   0xb   : > { %p844_p5 = por %p35_p2, %p34_p0  ;;  %p848_p6 = por %p41_p4, %p40_p3 }
   0xc   : > { %p127_p7 = scmp.eq.s32.totalorder %s826_s19, 1  ;;  %p133_p8 = scmp.eq.s32.totalorder %s545_s20, 1 }
   0xd   : > { %p621_p10 = scmp.lt.s32.totalorder %s765_s18, 2  ;;  %s162_s29 = sand.u32 1, %s761_s17  }
   0xe   : > { %p855_p11 = por %p127_p7, %p34_p0  ;;  %p859_p12 = por %p133_p8, %p40_p3 }
   0xf   : > { %s549_s30 = sshll.u32 %s765_s18, 7  ;;  %s548_s5 = sshll.u32 %s162_s29, 3 }
  0x10   : > { %s1026_s27 = scalar_select %p855_p11, 1, 0 }
  0x11   : > { %s1027_s28 = scalar_select %p859_p12, 1, 0 }
  0x12   : > { %s868_s8 = scalar_lea.hbm %s1018_s0, %s549_s30  ;;  %s166_s9 = scalar_lea.vmem [#allocation4], %s548_s5 }
  0x13   : > { %s173_s10 = sshll.u32 %s166_s9, 4  ;;  %p872_p13 = pnand %p621_p10, %p844_p5  ;;  %s876_s10 = int_to_ptr.vmem [resolvable:$true] %s173_s10 }
  0x14   : > { %s163_s12 = scalar_lea.sflag [#allocation5], %s162_s29  ;;  %s669_s13 = scalar_lea.hbm %s868_s8, 128 }
  0x15   : > { %p670_p2 = scmp.ne.s32.totalorder %s868_s8, %s669_s13  ;;  %p671_p3 = pneg %p872_p13 }
  0x16   : > { %s674_s22 = scalar_lea.hbm %s1018_s0, 256  ;;  %p675_p5 = scmp.lt.u32.totalorder %s868_s8, %s1018_s0 }
  0x17   : > { %p672_p4 = pnand %p671_p3, %p670_p2  ;;  %p676_p8 = scmp.lt.u32.totalorder %s674_s22, %s669_s13 }
  0x18   : > { %p678_p9 = scmp.lt.u32.totalorder %s669_s13, %s868_s8 }
  0x19   : > { %p673_p7 = pneg %p672_p4  ;;  %p677_p10 = por %p676_p8, %p675_p5 }
  0x1b   : > { %p679_p0 = por %p678_p9, %p677_p10 }
  0x1d   : > { %p680_p1 = pnand %p679_p0, %p673_p7 }
  0x1f   : > { %683 = shalt.err (!%p680_p1)
}
  0x20   : > { %s684_s29 = scalar_lea.vmem %s876_s10, 128  ;;  %s767_s30 = smov [#allocation4]  }
  0x21   : > { %p685_p2 = scmp.ne.s32.totalorder %s876_s10, %s684_s29  ;;  %s689_s5 = sshll.u32 %s767_s30, 4  ;;  %s690_s5 = int_to_ptr.vmem [resolvable:$false] %s689_s5 }
  0x22   : > { %s691_s6 = scalar_lea.vmem %s690_s5, 256  ;;  %p692_p11 = scmp.lt.s32.totalorder %s876_s10, %s690_s5 }
  0x23   : > { %p687_p4 = pnand %p685_p2, %p671_p3  ;;  %p693_p5 = scmp.lt.s32.totalorder %s691_s6, %s684_s29 }
  0x25   : > { %p688_p12 = pneg %p687_p4  ;;  %p694_p8 = por %p693_p5, %p692_p11 }
  0x27   : > { %p695_p9 = pnand %p694_p8, %p688_p12 }
  0x29   : > { %698 = shalt.err (!%p695_p9)
}
  0x2a   : > { %616 = dma.hbm_to_vmem [thread:$0]  (!%p872_p13), %s868_s8, 128, %s876_s10, %s163_s12  }
  0x2b   : > { %p1029_p0 = scmp.lt.s32.totalorder %s765_s18, 3  ;;  %p1030_p1 = scmp.ge.s32.totalorder %s765_s18, 1 }
  0x2d   : > { %p179_p3 = pnand %p1030_p1, %p1029_p0 }
  0x2e   : > { %s910_s7 = sand.u32 (!%p179_p3), 1, %s757_s16  }
  0x2f   : > { %182 = sbr.rel (%p179_p3) target bundleno = 1152 (0x480), region = 36  ;;  %s551_s9 = sshll.u32 (!%p179_p3), %s910_s7, 3 }
  0x30   : > { %s185_s13 = scalar_lea.sflag (!%p179_p3), [#allocation5], %s910_s7  ;;  %s188_s11 = scalar_lea.vmem (!%p179_p3), [#allocation4], %s551_s9 }
  0x36   : > { %744 = dma.done.wait (%p848_p6), %s185_s13, 128  }
  0x37   : > { %746 = vsyncadd (%p848_p6), %s185_s13, 4294967168  ;;  %v768_v0 = vmov 0   ;;  %v213_v1 = vld [vmem:[%s1021_s3] sm:$0xff]  ;;  %v769_v2 = vmov 1   ;;  %vm214_vm0 = vcmask 15360   ;;  %vm216_vm1 = vcmask 162960  }
  0x38   : > { %666 = vset.pattern.permute.xlu0 %v768_v0  ;;  %v770_v3 = vmov 0.0   ;;  %v925_v5 = vld [vmem:[%s188_s11] sm:$0xff]  ;;  %s771_s26 = smov 2   ;;  %vm235_vm2 = vcmask 146448   ;;  %v772_v11 = vmov 0.0|0.0   ;;  %vm238_vm3 = vcmask 130048  }
  0x39   : > { %221 = vperm.xlu0 %666, %v213_v1   ;;  %215 = vst.msk [vmem:[#allocation2] sm:$0xff] %vm214_vm0, %v770_v3  ;;  %597 = vmatprep.subr.bf16.mxu0 %v772_v11  ;;  %s773_s12 = smov 125   ;;  %s774_s14 = smov 127   ;;  %vm776_vm4 = vmmov 0   ;;  %v777_v13 = vmov 2   ;;  %v264_v24 = vld [vmem:[%s1019_s1] sm:$0xff] }
  0x3a   : > { %217 = vst.msk [vmem:[#allocation2] sm:$0xff] %vm216_vm1, %v770_v3  ;;  %603 = vmatprep.subr.bf16.mxu1 %v772_v11  ;;  %s775_s20 = smov 126   ;;  %581 = vmatprep.mubr.msk.f32.mxu0 %vm776_vm4, %v770_v3  ;;  %s778_s22 = smov 124   ;;  %vm274_vm5 = vcmask 326656   ;;  %v380_v43 = vld [vmem:[%s1020_s2] sm:$0xff] }
  0x3b   : > { %594 = vmatprep.mubr.msk.f32.mxu1 %vm776_vm4, %v770_v3  ;;  %s556_s5 = sshll.u32 %s826_s19, 7  ;;  %s212_s6 = scalar_lea.vmem [#allocation7], %s551_s9 }
  0x3c   : > { %s475_s13 = sshll.u32 %s212_s6, 4  ;;  %s973_s10 = scalar_lea.hbm %s1022_s4, %s556_s5  ;;  %s975_s13 = int_to_ptr.vmem [resolvable:$true] %s475_s13 }
  0x3d   : > { %667 = vset.pattern.permute.xlu0 %v769_v2  ;;  %s462_s19 = scalar_lea.sflag [#allocation6], %s910_s7  ;;  %p1031_p11 = scmp.ne.s32.totalorder %s1026_s27, 0 }
  0x3e   : > { %226 = vperm.xlu0 %667, %v213_v1   ;;  %s779_s9 = smov [#allocation7]  }
  0x42   : > { %668 = vset.pattern.permute.xlu0 %v777_v13 }
  0xb8   : > { %v222_v4 = vpop.permute.xlu0 %221 }
  0xb9   : > { %v224_v6 = vmul.f32 %v222_v4, %v925_v5 }
  0xbd   : > { %v227_v7 = vpop.permute.xlu0 %226 }
  0xbe   : > { %v229_v8 = vadd.f32 %v227_v7, %v224_v6 }
  0xc0   : > { %v230_v9 = vmax.f32 %v229_v8, 0.0 }
  0xc2   : > { %232 = vrot.lane.b32.xlu1 %v230_v9, %s771_s26 }
 0x134   : > { %v233_v10 = vpop.permute.xlu1 %232 }
 0x135   : > { %236 = vst.msk [vmem:[#allocation2] sm:$0xff] %vm235_vm2, %v233_v10 }
 0x13c   : > { %v237_v12 = vld [vmem:[#allocation2] sm:$0xff] }
 0x13d   : > { %254 = vrot.lane.b32.xlu0 %v237_v12, %s773_s12  ;;  %242 = vrot.lane.b32.xlu1 %v237_v12, %s774_s14  ;;  %239 = vst.msk [vmem:[#allocation3] sm:$0xff] %vm238_vm3, %v237_v12 }
 0x141   : > { %248 = vrot.lane.b32.xlu1 %v237_v12, %s775_s20  ;;  %271 = vperm.xlu0 %668, %v213_v1  }
 0x144   : > { %v265_v18 = vld [vmem:[#allocation3] sm:$0xff] }
 0x145   : > { %260 = vrot.lane.b32.xlu1 %v237_v12, %s778_s22 }
 0x1af   : > { %v255_v14 = vpop.permute.xlu0 %254  ;;  %v243_v15 = vpop.permute.xlu1 %242 }
 0x1b0   : > { %257 = vst.msk [vmem:[#allocation3 + $0x18] sm:$0xff] %vm238_vm3, %v255_v14  ;;  %245 = vst.msk [vmem:[#allocation3 + $0x8] sm:$0xff] %vm238_vm3, %v243_v15 }
 0x1b3   : > { %v249_v16 = vpop.permute.xlu1 %248 }
 0x1b4   : > { %251 = vst.msk [vmem:[#allocation3 + $0x10] sm:$0xff] %vm238_vm3, %v249_v16 }
 0x1b7   : > { %v261_v17 = vpop.permute.xlu1 %260  ;;  %v266_v19 = vld [vmem:[#allocation3 + $0x8] sm:$0xff]  ;;  %v268_v22 = vld [vmem:[#allocation3 + $0x18] sm:$0xff] }
 0x1b8   : > { %263 = vst.msk [vmem:[#allocation3 + $0x20] sm:$0xff] %vm238_vm3, %v261_v17  ;;  %v598_v20 = vpack.c.bf16 %v266_v19, %v265_v18 }
 0x1ba   : > { %599 = vmatpush3.bf16.msra.mxu0 %v598_v20 }
 0x1bb   : > { %600 = vmatprep.subr.bf16.mxu0 %v772_v11  ;;  %v267_v21 = vld [vmem:[#allocation3 + $0x10] sm:$0xff] }
 0x1bc   : > { %v601_v23 = vpack.c.bf16 %v268_v22, %v267_v21 }
 0x1be   : > { %602 = vmatpush3.bf16.msra.mxu0 %v601_v23 }
 0x1bf   : > { %579 = vmatprep.subr.mxu0 %v770_v3  ;;  %v269_v25 = vld [vmem:[#allocation3 + $0x20] sm:$0xff] }
 0x1c0   : > { %v272_v26 = vpop.permute.xlu0 %271 }
 0x1c2   : > { %580 = vmatpush3.msra.mxu0 %v269_v25 }
 0x1c3   : > { %582 = vmatmul.mubr.msk.f32.vlgmr.msra.gmra.mrb[0].mxu0 %vm274_vm5, %v264_v24 }
 0x296   : > { %v344_v27 = vpop.f32.mrb[0].mxu0 }
 0x297   : > { %v345_v28 = vadd.f32 %v344_v27, %v272_v26  ;;  %v583_v29 = vpop.f32.mrb[1].mxu0 }
 0x299   : > { %v348_v30 = vmax.f32 %v345_v28, 0.0 }
 0x29b   : > { %350 = vrot.lane.b32.xlu1 %v348_v30, %s771_s26  ;;  %s699_s26 = scalar_lea.vmem %s975_s13, 128 }
 0x29c   : > { %p700_p6 = scmp.ne.s32.totalorder %s975_s13, %s699_s26 }
 0x29e   : > { %p701_p12 = pnand %p700_p6, %p1031_p11 }
 0x2a0   : > { %p702_p13 = pneg %p701_p12 }
 0x30d   : > { %v351_v31 = vpop.permute.xlu1 %350 }
 0x30e   : > { %353 = vst.msk [vmem:[#allocation2] sm:$0xff] %vm235_vm2, %v351_v31 }
 0x315   : > { %v362_v32 = vld [vmem:[#allocation2] sm:$0xff] }
 0x316   : > { %364 = vrot.lane.b32.xlu0 %v362_v32, %s775_s20  ;;  %358 = vrot.lane.b32.xlu1 %v362_v32, %s774_s14  ;;  %355 = vst.msk [vmem:[#allocation3] sm:$0xff] %vm238_vm3, %v362_v32 }
 0x31a   : > { %376 = vrot.lane.b32.xlu0 %v362_v32, %s778_s22  ;;  %370 = vrot.lane.b32.xlu1 %v362_v32, %s773_s12  ;;  %s703_s12 = sshll.u32 %s779_s9, 4  ;;  %s704_s12 = int_to_ptr.vmem [resolvable:$false] %s703_s12 }
 0x31b   : > { %s705_s14 = scalar_lea.vmem %s704_s12, 256  ;;  %p706_p7 = scmp.lt.s32.totalorder %s975_s13, %s704_s12 }
 0x31c   : > { %p707_p10 = scmp.lt.s32.totalorder %s705_s14, %s699_s26 }
 0x31d   : > { %v381_v37 = vld [vmem:[#allocation3] sm:$0xff] }
 0x31e   : > { %p708_p2 = por %p707_p10, %p706_p7 }
 0x320   : > { %p709_p4 = pnand %p708_p2, %p702_p13 }
 0x388   : > { %v365_v33 = vpop.permute.xlu0 %364  ;;  %v359_v34 = vpop.permute.xlu1 %358 }
 0x389   : > { %367 = vst.msk [vmem:[#allocation3 + $0x10] sm:$0xff] %vm238_vm3, %v365_v33  ;;  %361 = vst.msk [vmem:[#allocation3 + $0x8] sm:$0xff] %vm238_vm3, %v359_v34 }
 0x38c   : > { %v377_v35 = vpop.permute.xlu0 %376  ;;  %v371_v36 = vpop.permute.xlu1 %370 }
 0x38d   : > { %379 = vst.msk [vmem:[#allocation3 + $0x20] sm:$0xff] %vm238_vm3, %v377_v35  ;;  %373 = vst.msk [vmem:[#allocation3 + $0x18] sm:$0xff] %vm238_vm3, %v371_v36 }
 0x390   : > { %v382_v38 = vld [vmem:[#allocation3 + $0x8] sm:$0xff]  ;;  %v383_v40 = vld [vmem:[#allocation3 + $0x10] sm:$0xff] }
 0x391   : > { %v604_v39 = vpack.c.bf16 %v382_v38, %v381_v37 }
 0x393   : > { %605 = vmatpush3.bf16.msra.mxu1 %v604_v39 }
 0x394   : > { %606 = vmatprep.subr.bf16.mxu1 %v772_v11  ;;  %v384_v41 = vld [vmem:[#allocation3 + $0x18] sm:$0xff]  ;;  %v385_v44 = vld [vmem:[#allocation3 + $0x20] sm:$0xff] }
 0x395   : > { %v607_v42 = vpack.c.bf16 %v384_v41, %v383_v40 }
 0x397   : > { %608 = vmatpush3.bf16.msra.mxu1 %v607_v42 }
 0x398   : > { %592 = vmatprep.subr.mxu1 %v770_v3 }
 0x39b   : > { %593 = vmatpush3.msra.mxu1 %v385_v44 }
 0x39c   : > { %595 = vmatmul.mubr.msk.f32.vlgmr.msra.gmra.mrb[0].mxu1 %vm274_vm5, %v380_v43 }
 0x46f   : > { %v456_v45 = vpop.f32.mrb[0].mxu1 }
 0x470   : > { %v457_v46 = vadd.f32 %v456_v45, %v925_v5  ;;  %v596_v47 = vpop.f32.mrb[1].mxu1 }
 0x472   : > { %460 = vst.msk [vmem:[%s212_s6] sm:$0xff] %vm238_vm3, %v457_v46 }
 0x473   : > { %712 = shalt.err (!%p709_p4)
}
 0x474   : > { %s713_s7 = scalar_lea.hbm %s973_s10, 128  ;;  %s717_s23 = scalar_lea.hbm %s1022_s4, 256 }
 0x475   : > { %p714_p5 = scmp.ne.s32.totalorder %s973_s10, %s713_s7  ;;  %p718_p0 = scmp.lt.u32.totalorder %s973_s10, %s1022_s4 }
 0x476   : > { %p719_p1 = scmp.lt.u32.totalorder %s717_s23, %s713_s7  ;;  %p721_p6 = scmp.lt.u32.totalorder %s713_s7, %s973_s10 }
 0x477   : > { %p715_p8 = pnand %p714_p5, %p1031_p11 }
 0x478   : > { %p720_p3 = por %p719_p1, %p718_p0 }
 0x479   : > { %p716_p9 = pneg %p715_p8 }
 0x47a   : > { %p722_p12 = por %p721_p6, %p720_p3 }
 0x47c   : > { %p723_p13 = pnand %p722_p12, %p716_p9 }
 0x47e   : > { %726 = shalt.err (!%p723_p13)
}
 0x47f   : > { %611 = dma.vmem_to_hbm [thread:$0]  (%p1031_p11), %s975_s13, 128, %s973_s10, %s462_s19  }
 0x480 PF: > { %s487_s30 = sand.u32 1, %s753_s15   ;;  %p1032_p7 = scmp.ne.s32.totalorder %s1027_s28, 0 }
 0x481   : > { %p1033_p10 = scmp.ge.s32.totalorder %s765_s18, 2  ;;  %s488_s5 = scalar_lea.sflag [#allocation6], %s487_s30 }
 0x483   : > { %p618_p2 = pnand %p1033_p10, %p1032_p7 }
 0x485   : > { %748 = dma.done.wait (!%p618_p2), %s488_s5, 128  }
 0x486   : > { %750 = vsyncadd (!%p618_p2), %s488_s5, 4294967168  ;;  %p17_p4 = scmp.ge.s32.totalorder %s830_s21, 4   ;;  %s1034_s15 = smov %s757_s16 }
 0x487   : > { %s1035_s16 = smov %s761_s17  ;;  %s1036_s17 = smov %s842_s24 }
 0x488   : > { %s1037_s18 = smov %s830_s21  ;;  %19 = sbr.rel (!%p17_p4) target bundleno = 5 (0x5), region = 81 }
 0x48f   :  { %493 = vsyncpa [#allocation5], 1 }
 0x490   :  { %495 = vsyncpa [#allocation5 + $0x1], 1 }
 0x491   :  { %496 = vsyncpa [#allocation6], 1 }
 0x492   :  { %498 = vsyncpa [#allocation6 + $0x1], 1 }

</bundles_post_ra>
